<compile_context>
chip_gen: v5e
topology: v5e:2x2
jax: 0.10.0
libtpu: 0.0.40
codegen_flags: <defaults>
</compile_context>

<pallas_src>
import functools

import jax
import jax.numpy as jnp
import numpy as np
from jax import lax
from jax.experimental import pallas as pl
from jax.experimental.pallas import tpu as pltpu


# ----------------------------------------------------------------------------
# helpers
# ----------------------------------------------------------------------------
def _round_up(x, m):
    return (x + m - 1) // m * m


def _pick_batch_tile(n, cap):
    """Batch tile (multiple of 8 sublanes, <= cap) and the padded extent."""
    cap = max(8, (cap // 8) * 8)
    t = min(cap, _round_up(n, 8))
    return t, _round_up(n, t)


def _pick_item_tiling(num_items, item_tile, num_splits):
    """Lane-dense item tile (multiple of 128 lanes) and padded item extent."""
    ti = max(128, (item_tile // 128) * 128)
    ti = min(ti, _round_up(num_items, 128))
    ni_pad = _round_up(num_items, ti * num_splits)
    return ti, ni_pad


def _default_item_splits():
    # v7x has 2 TensorCores per chip: split the HBM item scan across them.
    # v5e / v6e are single-TC -> keep the single-split grid (no overhead).
    try:
        kind = jax.devices()[0].device_kind.lower()
    except Exception:  # pragma: no cover
        return 1
    return 2 if "v7" in kind else 1


# ----------------------------------------------------------------------------
# Kernel 1: partial online-softmax scan for
#   int_emb = softmax(Gr @ Gi.T, axis=1) @ Gi
# Gi streamed lane-dense as Gi.T blocks of shape (K, item_tile).
# ----------------------------------------------------------------------------
def _int_emb_kernel(gr_ref, git_ref, bias_ref, m_out, l_out, acc_out,
                    m_sc, l_sc, acc_sc):
    j = pl.program_id(1)                       # streamed item-tile axis (reduction)

    @pl.when(j == 0)
    def _():
        m_sc[...] = jnp.full_like(m_sc, -jnp.inf)
        l_sc[...] = jnp.zeros_like(l_sc)
        acc_sc[...] = jnp.zeros_like(acc_sc)

    gr = gr_ref[...]                           # (nint_p, K)  table dtype, resident
    git = git_ref[...]                         # (K, ti)      table dtype, streamed
    # logits tile (nint_p, ti): native-dtype MXU operands, f32 accumulation.
    s = lax.dot_general(gr, git, (((1,), (0,)), ((), ())),
                        preferred_element_type=jnp.float32)
    # Padding mask streamed as a tiny (1, ti) additive bias (0 on real columns,
    # -1e30 on zero-padded ones): one broadcast add instead of a per-step
    # iota+cmp+select; it is only nonzero on the final tiles of the stream.
    s = s + bias_ref[...]

    m_new = jnp.maximum(m_sc[...], jnp.max(s, axis=1, keepdims=True))  # (nint_p, 1)
    alpha = jnp.exp(m_sc[...] - m_new)
    p = jnp.exp(s - m_new)                                             # f32
    l_sc[...] = alpha * l_sc[...] + jnp.sum(p, axis=1, keepdims=True)
    acc_sc[...] = alpha * acc_sc[...] + lax.dot_general(
        p.astype(git.dtype), git, (((1,), (1,)), ((), ())),
        preferred_element_type=jnp.float32)
    m_sc[...] = m_new

    @pl.when(j == pl.num_programs(1) - 1)
    def _():
        # Emit raw partials; exact divide + cross-split combine in the wrapper.
        m_out[...] = m_sc[...]
        l_out[...] = l_sc[...]
        acc_out[...] = acc_sc[...]


def compute_interest_embeddings(Gr, Gi, *, item_tile=16384, item_splits=None,
                                gi_buffers=None):
    """int_emb = softmax(Gr @ Gi.T, axis=1) @ Gi  -> (nint, K) float32."""
    nint, K = Gr.shape
    num_items = Gi.shape[0]
    splits = _default_item_splits() if item_splits is None else int(item_splits)
    splits = max(1, splits)

    ti, ni_pad = _pick_item_tiling(num_items, item_tile, splits)
    tiles_per_split = ni_pad // (ti * splits)
    assert ni_pad == tiles_per_split * ti * splits
    nint_p = _round_up(nint, 8)                 # sublane-align the interest axis

    # Lane-dense streamed layout: (K, ni_pad), zero-padded columns.
    git = Gi.T
    if ni_pad != num_items:
        git = jnp.pad(git, ((0, 0), (0, ni_pad - num_items)))
    gr = Gr.astype(Gi.dtype)
    if nint_p != nint:
        gr = jnp.pad(gr, ((0, nint_p - nint), (0, 0)))
    col = jnp.arange(ni_pad, dtype=jnp.int32)
    bias = jnp.where(col < num_items, 0.0, -1e30).astype(jnp.float32)[None, :]

    itemsize = jnp.dtype(Gi.dtype).itemsize
    nbuf = 2 if gi_buffers is None else max(2, int(gi_buffers))
    # (K, ti) blocks are fully lane-dense -> no 128-lane padding on the stream.
    vmem_est = (nbuf * _round_up(K, 8) * ti * itemsize     # streamed Gi.T blocks
                + 2 * 8 * ti * 4                           # bias blocks
                + 10 * nint_p * 128 * 4)                   # Gr / scratch / partials
    vmem_limit = int(min(max(2 * vmem_est, 32 << 20), 60 << 20))  # v7x-safe cap

    cost = pl.CostEstimate(
        flops=4 * nint_p * ni_pad * K,
        transcendentals=nint_p * ni_pad,
        bytes_accessed=(ni_pad * K * itemsize + ni_pad * 4
                        + nint_p * K * itemsize
                        + splits * nint_p * (K + 2) * 4))

    git_spec_kwargs = {}
    if gi_buffers is not None and int(gi_buffers) > 2:
        # Deeper buffering only if a profile shows exposed DMA on the stream.
        git_spec_kwargs["pipeline_mode"] = pl.Buffered(int(gi_buffers))

    m_p, l_p, acc_p = pl.pallas_call(
        _int_emb_kernel,
        out_shape=(
            jax.ShapeDtypeStruct((splits * nint_p, 1), jnp.float32),
            jax.ShapeDtypeStruct((splits * nint_p, 1), jnp.float32),
            jax.ShapeDtypeStruct((splits * nint_p, K), jnp.float32),
        ),
        grid_spec=pltpu.PrefetchScalarGridSpec(
            num_scalar_prefetch=0,
            grid=(splits, tiles_per_split),
            in_specs=[
                pl.BlockSpec((nint_p, K), lambda s, j: (0, 0)),           # Gr
                pl.BlockSpec((K, ti),
                             lambda s, j: (0, s * tiles_per_split + j),
                             **git_spec_kwargs),                          # Gi.T
                pl.BlockSpec((1, ti),
                             lambda s, j: (0, s * tiles_per_split + j)),  # pad bias
            ],
            out_specs=[
                pl.BlockSpec((nint_p, 1), lambda s, j: (s, 0)),
                pl.BlockSpec((nint_p, 1), lambda s, j: (s, 0)),
                pl.BlockSpec((nint_p, K), lambda s, j: (s, 0)),
            ],
            scratch_shapes=[
                pltpu.VMEM((nint_p, 1), jnp.float32),   # running max
                pltpu.VMEM((nint_p, 1), jnp.float32),   # running denom
                pltpu.VMEM((nint_p, K), jnp.float32),   # weighted-sum accumulator
            ],
        ),
        compiler_params=pltpu.CompilerParams(
            dimension_semantics=("parallel", "arbitrary"),
            vmem_limit_bytes=vmem_limit),
        cost_estimate=cost,
    )(gr, git, bias)

    # Flash-combine the per-split partials (tiny: splits x nint x K) and do the
    # EXACT final divide (no approx reciprocal touches int_emb).  A split made
    # only of padded columns carries m = -1e30, so exp(m - m_glob) underflows
    # to 0 and it contributes nothing.
    m_p = m_p.reshape(splits, nint_p, 1)
    l_p = l_p.reshape(splits, nint_p, 1)
    acc_p = acc_p.reshape(splits, nint_p, K)
    m = jnp.max(m_p, axis=0)
    scale = jnp.exp(m_p - m)
    l = jnp.sum(l_p * scale, axis=0)
    acc = jnp.sum(acc_p * scale, axis=0)
    return (acc / l)[:nint]


# ----------------------------------------------------------------------------
# Kernel 2: gamma_u_out = gamma_u + softmax(gamma_u @ int_emb.T, 1) @ int_emb
# ----------------------------------------------------------------------------
def _user_interest_kernel(gu_ref, int_ref, gu_out_ref):
    gu = gu_ref[...]                              # (bt, K)    param dtype
    it = int_ref[...]                             # (nint, K)  same dtype, resident
    logits = lax.dot_general(gu, it, (((1,), (1,)), ((), ())),
                             preferred_element_type=jnp.float32)   # (bt, nint) f32
    m = jnp.max(logits, axis=1, keepdims=True)
    e = jnp.exp(logits - m)
    p = e * pl.reciprocal(jnp.sum(e, axis=1, keepdims=True), approx=True)
    u_int = lax.dot_general(p.astype(it.dtype), it, (((1,), (0,)), ((), ())),
                            preferred_element_type=jnp.float32)    # (bt, K) f32
    gu_out_ref[...] = (gu.astype(jnp.float32) + u_int).astype(gu_out_ref.dtype)


def _apply_user_interest(gamma_u_pad, int_emb, *, bt):
    B_pad, K = gamma_u_pad.shape
    nint = int_emb.shape[0]
    itemsize = jnp.dtype(gamma_u_pad.dtype).itemsize
    vmem_est = (2 * bt * _round_up(K, 128) * itemsize   # gamma_u blocks (lane-padded)
                + 2 * bt * _round_up(K, 128) * 4        # output blocks
                + 2 * _round_up(nint, 8) * _round_up(K, 128) * itemsize)
    vmem_limit = int(min(max(2 * vmem_est, 32 << 20), 60 << 20))
    cost = pl.CostEstimate(
        flops=4 * B_pad * nint * K,
        transcendentals=B_pad * nint,
        bytes_accessed=B_pad * K * (itemsize + 4) + nint * K * itemsize)
    return pl.pallas_call(
        _user_interest_kernel,
        out_shape=jax.ShapeDtypeStruct((B_pad, K), jnp.float32),
        grid_spec=pltpu.PrefetchScalarGridSpec(
            num_scalar_prefetch=0,
            grid=(B_pad // bt,),
            in_specs=[
                pl.BlockSpec((bt, K), lambda b: (b, 0)),     # gamma_u tile (streamed)
                pl.BlockSpec((nint, K), lambda b: (0, 0)),   # int_emb (resident)
            ],
            out_specs=pl.BlockSpec((bt, K), lambda b: (b, 0)),
        ),
        compiler_params=pltpu.CompilerParams(
            dimension_semantics=("parallel",),               # megacore sharding
            vmem_limit_bytes=vmem_limit),
        cost_estimate=cost,
    )(gamma_u_pad, int_emb)


# ----------------------------------------------------------------------------
# Forward wrapper — matches BPRMFINTModel.forward((users, items))
# ----------------------------------------------------------------------------
def bprmfint_forward(Gu, Gi, Gr, users, items, *, batch_tile=4096,
                     item_tile=16384, item_splits=None, gi_buffers=None):
    """Returns (xui, gamma_u, gamma_i), matching the PyTorch module."""
    # Accept (B,) or (B, 1) index tensors; flattening reproduces the intent of
    # torch.squeeze without its B==1 / K==1 dimension-collapse corner case.
    users = jnp.asarray(users).reshape(-1)
    items = jnp.asarray(items).reshape(-1)

    # Batch-independent interest embeddings (hoisted, computed once per fwd).
    int_emb = compute_interest_embeddings(
        Gr, Gi, item_tile=item_tile, item_splits=item_splits,
        gi_buffers=gi_buffers)

    B = users.shape[0]
    bt, B_pad = _pick_batch_tile(B, batch_tile)

    # TODO(synk): fuse the Gu/Gi row gathers into the batch kernel via scalar
    # prefetch + per-row DMA; at K=32 per-row DMAs are descriptor-bound, so the
    # single fused XLA gather is kept in the wrapper for now.
    # NOTE: padded batch rows gather Gu[0] and run through kernel 2 before
    # being sliced off below -- they must stay finite (no NaN-producing mask).
    users_p = jnp.pad(users, (0, B_pad - B)) if B_pad != B else users
    gamma_u = Gu[users_p]                         # (B_pad, K), table dtype
    gamma_i = Gi[items]                           # (B, K),     table dtype

    # Feed the MXU native-dtype operands: int_emb joins gamma_u's dtype.
    gamma_u_out = _apply_user_interest(
        gamma_u, int_emb.astype(Gu.dtype), bt=bt)[:B]

    # Lane-dense xui in XLA (avoids a (B, 1) masked-store kernel output).
    xui = jnp.sum(gamma_u_out * gamma_i.astype(gamma_u_out.dtype), axis=1)
    return xui, gamma_u_out, gamma_i


# ----------------------------------------------------------------------------
# reference + demo
# ----------------------------------------------------------------------------
def _xavier_uniform(key, shape):
    fan_out, fan_in = shape
    limit = float(np.sqrt(6.0 / (fan_in + fan_out)))
    return jax.random.uniform(key, shape, jnp.float32, -limit, limit)


def _reference_forward(Gu, Gi, Gr, users, items):
    gamma_u = Gu[users]
    gamma_i = Gi[items]
    int_emb = jax.nn.softmax(Gr @ Gi.T, axis=1) @ Gi
    u_int = jax.nn.softmax(gamma_u @ int_emb.T, axis=1) @ int_emb
    gamma_u = gamma_u + u_int
    xui = jnp.sum(gamma_u * gamma_i, axis=1)
    return xui, gamma_u, gamma_i


if __name__ == "__main__":
    # Small deterministic setup. num_items=300 / batch=20 exercise multi-step
    # item and batch grids, the zero-pad + bias-mask path and padded rows.
    num_users, num_items, embed_k, nint = 64, 300, 32, 8
    batch = 20

    key = jax.random.PRNGKey(0)
    k_gu, k_gi, k_gr, k_u, k_i = jax.random.split(key, 5)
    Gu = _xavier_uniform(k_gu, (num_users, embed_k))
    Gi = _xavier_uniform(k_gi, (num_items, embed_k))
    Gr = _xavier_uniform(k_gr, (nint, embed_k))

    users = jax.random.randint(k_u, (batch,), 0, num_users)
    items = jax.random.randint(k_i, (batch,), 0, num_items)

    # Small tiles + item_splits=2 so the multi-step item grid, the per-split
    # flash combine and the multi-step batch grid are all exercised even on a
    # single-TensorCore chip.  Production defaults: item_tile=16384,
    # batch_tile=4096, item_splits auto-detected (2 on v7x).
    fwd = jax.jit(functools.partial(bprmfint_forward, batch_tile=8,
                                    item_tile=128, item_splits=2))
    xui, gamma_u, gamma_i = fwd(Gu, Gi, Gr, users, items)
    jax.block_until_ready((xui, gamma_u, gamma_i))

    # Validate against the pure-JAX reference. Tolerances cover the approx
    # reciprocal in kernel 2 and the reordered online f32 accumulation.
    xui_r, gamma_u_r, gamma_i_r = _reference_forward(Gu, Gi, Gr, users, items)
    np.testing.assert_allclose(np.asarray(xui), np.asarray(xui_r),
                               rtol=5e-3, atol=1e-3)
    np.testing.assert_allclose(np.asarray(gamma_u), np.asarray(gamma_u_r),
                               rtol=5e-3, atol=1e-3)
    np.testing.assert_array_equal(np.asarray(gamma_i), np.asarray(gamma_i_r))

    print("KERNEL_OK")
</pallas_src>

<mosaic_0001>
module attributes {stable_mosaic.version = 11 : i64} {
  func.func @_int_emb_kernel(%arg0: i32, %arg1: i32, %arg2: memref<8x32xf32, #tpu.memory_space<vmem>>, %arg3: memref<32x128xf32, #tpu.memory_space<vmem>>, %arg4: memref<1x128xf32, #tpu.memory_space<vmem>>, %arg5: memref<8x1xf32, #tpu.memory_space<vmem>>, %arg6: memref<8x1xf32, #tpu.memory_space<vmem>>, %arg7: memref<8x32xf32, #tpu.memory_space<vmem>>, %arg8: memref<8x1xf32, #tpu.memory_space<vmem>>, %arg9: memref<8x1xf32, #tpu.memory_space<vmem>>, %arg10: memref<8x32xf32, #tpu.memory_space<vmem>>) attributes {dimension_semantics = [#tpu.dimension_semantics<parallel>, #tpu.dimension_semantics<arbitrary>], iteration_bounds = array<i64: 2, 2>, scalar_prefetch = 0 : i64, scratch_operands = 3 : i64, tpu.core_type = #tpu.core_type<tc>, window_params = [{pipeline_mode = #tpu.pipeline_mode<synchronous>, transform_indices = @transform_0, window_bounds = array<i64: 8, 32>}, {transform_indices = @transform_1, window_bounds = array<i64: 32, 128>}, {transform_indices = @transform_2, window_bounds = array<i64: 1, 128>}, {transform_indices = @transform_3, window_bounds = array<i64: 8, 1>}, {transform_indices = @transform_4, window_bounds = array<i64: 8, 1>}, {transform_indices = @transform_5, window_bounds = array<i64: 8, 32>}]} {
    %c0_i32 = arith.constant 0 : i32
    %0 = arith.cmpi eq, %arg1, %c0_i32 : i32
    %1 = arith.extui %0 : i1 to i32
    %c0_i32_0 = arith.constant 0 : i32
    %2 = arith.cmpi ne, %1, %c0_i32_0 : i32
    scf.if %2 {
      %cst_24 = arith.constant 0xFF800000 : f32
      %35 = vector.broadcast %cst_24 : f32 to vector<8x1xf32>
      %c0_25 = arith.constant 0 : index
      %c0_26 = arith.constant 0 : index
      %36 = vector.load %arg8[%c0_25, %c0_26] : memref<8x1xf32, #tpu.memory_space<vmem>>, vector<8x1xf32>
      tpu.vector_store %arg8[%c0_25, %c0_26], %35 {strides = array<i32>} : memref<8x1xf32, #tpu.memory_space<vmem>>, vector<8x1xf32>,
      %cst_27 = arith.constant 0.000000e+00 : f32
      %37 = vector.broadcast %cst_27 : f32 to vector<8x1xf32>
      %c0_28 = arith.constant 0 : index
      %c0_29 = arith.constant 0 : index
      %38 = vector.load %arg9[%c0_28, %c0_29] : memref<8x1xf32, #tpu.memory_space<vmem>>, vector<8x1xf32>
      tpu.vector_store %arg9[%c0_28, %c0_29], %37 {strides = array<i32>} : memref<8x1xf32, #tpu.memory_space<vmem>>, vector<8x1xf32>,
      %cst_30 = arith.constant 0.000000e+00 : f32
      %39 = vector.broadcast %cst_30 : f32 to vector<8x32xf32>
      %c0_31 = arith.constant 0 : index
      %c0_32 = arith.constant 0 : index
      %40 = vector.load %arg10[%c0_31, %c0_32] : memref<8x32xf32, #tpu.memory_space<vmem>>, vector<8x32xf32>
      tpu.vector_store %arg10[%c0_31, %c0_32], %39 {strides = array<i32>} : memref<8x32xf32, #tpu.memory_space<vmem>>, vector<8x32xf32>,
    } else {
    }
    %c0 = arith.constant 0 : index
    %c0_1 = arith.constant 0 : index
    %3 = vector.load %arg2[%c0, %c0_1] : memref<8x32xf32, #tpu.memory_space<vmem>>, vector<8x32xf32>
    %c0_2 = arith.constant 0 : index
    %c0_3 = arith.constant 0 : index
    %4 = vector.load %arg3[%c0_2, %c0_3] : memref<32x128xf32, #tpu.memory_space<vmem>>, vector<32x128xf32>
    %cst = arith.constant dense<0.000000e+00> : vector<8x128xf32>
    %5 = tpu.matmul %3, %4, %cst {dimension_numbers = #tpu.dot_dimension_numbers<[1], [0], [0], [1], [0, 0, 1, 1], [], []>} : vector<8x32xf32>, vector<32x128xf32>, vector<8x128xf32> -> vector<8x128xf32>
    %c0_4 = arith.constant 0 : index
    %c0_5 = arith.constant 0 : index
    %6 = vector.load %arg4[%c0_4, %c0_5] : memref<1x128xf32, #tpu.memory_space<vmem>>, vector<1x128xf32>
    %7 = vector.broadcast %6 : vector<1x128xf32> to vector<8x128xf32>
    %8 = arith.addf %5, %7 : vector<8x128xf32>
    %c0_6 = arith.constant 0 : index
    %c0_7 = arith.constant 0 : index
    %9 = vector.load %arg8[%c0_6, %c0_7] : memref<8x1xf32, #tpu.memory_space<vmem>>, vector<8x1xf32>
    %cst_8 = arith.constant dense<0xFF800000> : vector<8xf32>
    %10 = vector.multi_reduction <maximumf>, %8, %cst_8 [1] : vector<8x128xf32> to vector<8xf32>
    %11 = vector.shape_cast %10 : vector<8xf32> to vector<8x1xf32>
    %12 = arith.maximumf %9, %11 : vector<8x1xf32>
    %c0_9 = arith.constant 0 : index
    %c0_10 = arith.constant 0 : index
    %13 = vector.load %arg8[%c0_9, %c0_10] : memref<8x1xf32, #tpu.memory_space<vmem>>, vector<8x1xf32>
    %14 = arith.subf %13, %12 : vector<8x1xf32>
    %15 = math.exp %14 : vector<8x1xf32>
    %16 = vector.broadcast %12 : vector<8x1xf32> to vector<8x128xf32>
    %17 = arith.subf %8, %16 : vector<8x128xf32>
    %18 = math.exp %17 : vector<8x128xf32>
    %c0_11 = arith.constant 0 : index
    %c0_12 = arith.constant 0 : index
    %19 = vector.load %arg9[%c0_11, %c0_12] : memref<8x1xf32, #tpu.memory_space<vmem>>, vector<8x1xf32>
    %20 = arith.mulf %15, %19 : vector<8x1xf32>
    %cst_13 = arith.constant dense<0.000000e+00> : vector<8xf32>
    %21 = vector.multi_reduction <add>, %18, %cst_13 [1] : vector<8x128xf32> to vector<8xf32>
    %22 = vector.shape_cast %21 : vector<8xf32> to vector<8x1xf32>
    %23 = arith.addf %20, %22 : vector<8x1xf32>
    %c0_14 = arith.constant 0 : index
    %c0_15 = arith.constant 0 : index
    %24 = vector.load %arg9[%c0_14, %c0_15] : memref<8x1xf32, #tpu.memory_space<vmem>>, vector<8x1xf32>
    tpu.vector_store %arg9[%c0_14, %c0_15], %23 {strides = array<i32>} : memref<8x1xf32, #tpu.memory_space<vmem>>, vector<8x1xf32>,
    %c0_16 = arith.constant 0 : index
    %c0_17 = arith.constant 0 : index
    %25 = vector.load %arg10[%c0_16, %c0_17] : memref<8x32xf32, #tpu.memory_space<vmem>>, vector<8x32xf32>
    %26 = vector.broadcast %15 : vector<8x1xf32> to vector<8x32xf32>
    %27 = arith.mulf %26, %25 : vector<8x32xf32>
    %cst_18 = arith.constant dense<0.000000e+00> : vector<8x32xf32>
    %28 = tpu.matmul %18, %4, %cst_18 {dimension_numbers = #tpu.dot_dimension_numbers<[1], [1], [0], [0], [0, 0, 1, 0], [], []>} : vector<8x128xf32>, vector<32x128xf32>, vector<8x32xf32> -> vector<8x32xf32>
    %29 = arith.addf %27, %28 : vector<8x32xf32>
    %c0_19 = arith.constant 0 : index
    %c0_20 = arith.constant 0 : index
    %30 = vector.load %arg10[%c0_19, %c0_20] : memref<8x32xf32, #tpu.memory_space<vmem>>, vector<8x32xf32>
    tpu.vector_store %arg10[%c0_19, %c0_20], %29 {strides = array<i32>} : memref<8x32xf32, #tpu.memory_space<vmem>>, vector<8x32xf32>,
    %c0_21 = arith.constant 0 : index
    %c0_22 = arith.constant 0 : index
    %31 = vector.load %arg8[%c0_21, %c0_22] : memref<8x1xf32, #tpu.memory_space<vmem>>, vector<8x1xf32>
    tpu.vector_store %arg8[%c0_21, %c0_22], %12 {strides = array<i32>} : memref<8x1xf32, #tpu.memory_space<vmem>>, vector<8x1xf32>,
    %c1_i32 = arith.constant 1 : i32
    %32 = arith.cmpi eq, %arg1, %c1_i32 : i32
    %33 = arith.extui %32 : i1 to i32
    %c0_i32_23 = arith.constant 0 : i32
    %34 = arith.cmpi ne, %33, %c0_i32_23 : i32
    scf.if %34 {
      %c0_24 = arith.constant 0 : index
      %c0_25 = arith.constant 0 : index
      %35 = vector.load %arg8[%c0_24, %c0_25] : memref<8x1xf32, #tpu.memory_space<vmem>>, vector<8x1xf32>
      %c0_26 = arith.constant 0 : index
      %c0_27 = arith.constant 0 : index
      %36 = vector.load %arg5[%c0_26, %c0_27] : memref<8x1xf32, #tpu.memory_space<vmem>>, vector<8x1xf32>
      tpu.vector_store %arg5[%c0_26, %c0_27], %35 {strides = array<i32>} : memref<8x1xf32, #tpu.memory_space<vmem>>, vector<8x1xf32>,
      %c0_28 = arith.constant 0 : index
      %c0_29 = arith.constant 0 : index
      %37 = vector.load %arg9[%c0_28, %c0_29] : memref<8x1xf32, #tpu.memory_space<vmem>>, vector<8x1xf32>
      %c0_30 = arith.constant 0 : index
      %c0_31 = arith.constant 0 : index
      %38 = vector.load %arg6[%c0_30, %c0_31] : memref<8x1xf32, #tpu.memory_space<vmem>>, vector<8x1xf32>
      tpu.vector_store %arg6[%c0_30, %c0_31], %37 {strides = array<i32>} : memref<8x1xf32, #tpu.memory_space<vmem>>, vector<8x1xf32>,
      %c0_32 = arith.constant 0 : index
      %c0_33 = arith.constant 0 : index
      %39 = vector.load %arg10[%c0_32, %c0_33] : memref<8x32xf32, #tpu.memory_space<vmem>>, vector<8x32xf32>
      %c0_34 = arith.constant 0 : index
      %c0_35 = arith.constant 0 : index
      %40 = vector.load %arg7[%c0_34, %c0_35] : memref<8x32xf32, #tpu.memory_space<vmem>>, vector<8x32xf32>
      tpu.vector_store %arg7[%c0_34, %c0_35], %39 {strides = array<i32>} : memref<8x32xf32, #tpu.memory_space<vmem>>, vector<8x32xf32>,
    } else {
    }
    return
  }
  func.func @transform_0(%arg0: i32, %arg1: i32) -> (i32, i32) {
    %c0_i32 = arith.constant 0 : i32
    %c0_i32_0 = arith.constant 0 : i32
    %c0_i32_1 = arith.constant 0 : i32
    return %c0_i32, %c0_i32_0 : i32, i32
  }
  func.func @transform_1(%arg0: i32, %arg1: i32) -> (i32, i32) {
    %c2_i32 = arith.constant 2 : i32
    %0 = arith.muli %arg0, %c2_i32 : i32
    %1 = arith.addi %0, %arg1 : i32
    %c0_i32 = arith.constant 0 : i32
    %c0_i32_0 = arith.constant 0 : i32
    return %c0_i32, %1 : i32, i32
  }
  func.func @transform_2(%arg0: i32, %arg1: i32) -> (i32, i32) {
    %c2_i32 = arith.constant 2 : i32
    %0 = arith.muli %arg0, %c2_i32 : i32
    %1 = arith.addi %0, %arg1 : i32
    %c0_i32 = arith.constant 0 : i32
    %c0_i32_0 = arith.constant 0 : i32
    return %c0_i32, %1 : i32, i32
  }
  func.func @transform_3(%arg0: i32, %arg1: i32) -> (i32, i32) {
    %c0_i32 = arith.constant 0 : i32
    %c0_i32_0 = arith.constant 0 : i32
    return %arg0, %c0_i32 : i32, i32
  }
  func.func @transform_4(%arg0: i32, %arg1: i32) -> (i32, i32) {
    %c0_i32 = arith.constant 0 : i32
    %c0_i32_0 = arith.constant 0 : i32
    return %arg0, %c0_i32 : i32, i32
  }
  func.func @transform_5(%arg0: i32, %arg1: i32) -> (i32, i32) {
    %c0_i32 = arith.constant 0 : i32
    %c0_i32_0 = arith.constant 0 : i32
    return %arg0, %c0_i32 : i32, i32
  }
}

module attributes {stable_mosaic.version = 11 : i64} {
  func.func @_user_interest_kernel(%arg0: i32, %arg1: memref<8x32xf32, #tpu.memory_space<vmem>>, %arg2: memref<8x32xf32, #tpu.memory_space<vmem>>, %arg3: memref<8x32xf32, #tpu.memory_space<vmem>>) attributes {dimension_semantics = [#tpu.dimension_semantics<parallel>], iteration_bounds = array<i64: 3>, scalar_prefetch = 0 : i64, scratch_operands = 0 : i64, tpu.core_type = #tpu.core_type<tc>, window_params = [{transform_indices = @transform_0, window_bounds = array<i64: 8, 32>}, {pipeline_mode = #tpu.pipeline_mode<synchronous>, transform_indices = @transform_1, window_bounds = array<i64: 8, 32>}, {transform_indices = @transform_2, window_bounds = array<i64: 8, 32>}]} {
    %c0 = arith.constant 0 : index
    %c0_0 = arith.constant 0 : index
    %0 = vector.load %arg1[%c0, %c0_0] : memref<8x32xf32, #tpu.memory_space<vmem>>, vector<8x32xf32>
    %c0_1 = arith.constant 0 : index
    %c0_2 = arith.constant 0 : index
    %1 = vector.load %arg2[%c0_1, %c0_2] : memref<8x32xf32, #tpu.memory_space<vmem>>, vector<8x32xf32>
    %cst = arith.constant dense<0.000000e+00> : vector<8x8xf32>
    %2 = tpu.matmul %0, %1, %cst {dimension_numbers = #tpu.dot_dimension_numbers<[1], [1], [0], [0], [0, 0, 1, 0], [], []>} : vector<8x32xf32>, vector<8x32xf32>, vector<8x8xf32> -> vector<8x8xf32>
    %cst_3 = arith.constant dense<0xFF800000> : vector<8xf32>
    %3 = vector.multi_reduction <maximumf>, %2, %cst_3 [1] : vector<8x8xf32> to vector<8xf32>
    %4 = vector.shape_cast %3 : vector<8xf32> to vector<8x1xf32>
    %5 = vector.broadcast %4 : vector<8x1xf32> to vector<8x8xf32>
    %6 = arith.subf %2, %5 : vector<8x8xf32>
    %7 = math.exp %6 : vector<8x8xf32>
    %cst_4 = arith.constant dense<0.000000e+00> : vector<8xf32>
    %8 = vector.multi_reduction <add>, %7, %cst_4 [1] : vector<8x8xf32> to vector<8xf32>
    %9 = vector.shape_cast %8 : vector<8xf32> to vector<8x1xf32>
    %10 = tpu.reciprocal %9 {approx = true} : vector<8x1xf32> -> vector<8x1xf32>
    %11 = vector.broadcast %10 : vector<8x1xf32> to vector<8x8xf32>
    %12 = arith.mulf %7, %11 : vector<8x8xf32>
    %cst_5 = arith.constant dense<0.000000e+00> : vector<8x32xf32>
    %13 = tpu.matmul %12, %1, %cst_5 {dimension_numbers = #tpu.dot_dimension_numbers<[1], [0], [0], [1], [0, 0, 1, 1], [], []>} : vector<8x8xf32>, vector<8x32xf32>, vector<8x32xf32> -> vector<8x32xf32>
    %14 = arith.addf %0, %13 : vector<8x32xf32>
    %c0_6 = arith.constant 0 : index
    %c0_7 = arith.constant 0 : index
    %15 = vector.load %arg3[%c0_6, %c0_7] : memref<8x32xf32, #tpu.memory_space<vmem>>, vector<8x32xf32>
    tpu.vector_store %arg3[%c0_6, %c0_7], %14 {strides = array<i32>} : memref<8x32xf32, #tpu.memory_space<vmem>>, vector<8x32xf32>,
    return
  }
  func.func @transform_0(%arg0: i32) -> (i32, i32) {
    %c0_i32 = arith.constant 0 : i32
    %c0_i32_0 = arith.constant 0 : i32
    return %arg0, %c0_i32 : i32, i32
  }
  func.func @transform_1(%arg0: i32) -> (i32, i32) {
    %c0_i32 = arith.constant 0 : i32
    %c0_i32_0 = arith.constant 0 : i32
    %c0_i32_1 = arith.constant 0 : i32
    return %c0_i32, %c0_i32_0 : i32, i32
  }
  func.func @transform_2(%arg0: i32) -> (i32, i32) {
    %c0_i32 = arith.constant 0 : i32
    %c0_i32_0 = arith.constant 0 : i32
    return %arg0, %c0_i32 : i32, i32
  }
}

</mosaic_0001>

<bundles_post_ra>
// kernel: bprmfint_forward.3
= control target key start
LH: loop header
LB: loop body
LE: loop exit
PB: predicated region body
PF: predicated region fallthrough
CT: control target
= control target key end

     0   :  { %s305_s9 = smov 0   ;;  %s328_s0 = inlined_call_operand.vmem [shape: f32[24,32], index: 0, kind: input, shape index: {}]   ;;  %s329_s1 = inlined_call_operand.vmem [shape: f32[8,32], index: 1, kind: input, shape index: {}]   ;;  %s330_s2 = inlined_call_operand.vmem [shape: f32[24,32], index: 2, kind: output, shape index: {}]  }
   0x1 LB: > { %s258_s10 = sadd.s32 4294967295, %s288_s9   ;;  %p262_p0 = scmp.ge.s32.totalorder %s288_s9, 1  ;;  %s288_s9 = sphi %s305_s9, %s12_s9  }
   0x2   : > { %p111_p1 = scmp.lt.s32.totalorder %s288_s9, 4 }
   0x4   : > { %p112_p2 = pnand %p262_p0, %p111_p1 }
   0x5   : > { %p131_p3 = scmp.lt.s32.totalorder (!%p112_p2), %s258_s10, 2 }
   0x6   : > { %115 = sbr.rel (%p112_p2) target bundleno = 524 (0x20c), region = 28 }
   0xb   : > { %v140_v0 = vld [vmem:[%s329_s1] sm:$0xff]  ;;  %vm141_vm0 = vcmask 261120   ;;  %s332_s10 = smov (!%p131_p3, %s258_s10), 2  ;;  %vm168_vm1 = vcmask 64512  }
   0xc   : > { %265 = vmatpush.xpose.msk.msra.mxu0 %vm141_vm0, %v140_v0  ;;  %198 = vmatpush.msra.mxu1 %v140_v0  ;;  %s263_s13 = sshll.u32 %s332_s10, 3 }
   0xd   : > { %s134_s16 = scalar_lea.vmem %s328_s0, %s263_s13  ;;  %s138_s19 = scalar_lea.vmem %s330_s2, %s263_s13 }
   0xe   : > { %v139_v1 = vld [vmem:[%s134_s16] sm:$0xff] }
   0xf   : > { %266 = vmatmul.msk.f32.vlgmr.msra.gmra.mxu0 %vm141_vm0, %v139_v1 }
  0x8c   : > { %v165_v2 = vpop.f32.mrf.mxu0 }
  0x8d   : > { %v169_v3 = vsel %vm168_vm1, %v165_v2, -inf }
  0x8e   : > { %170 = vmax.xlane.f32.xlu0 %v169_v3 }
 0x101   : > { %v171_v4 = vpop.xlane.xlu0 %170 }
 0x102   : > { %v172_v5 = vsub.f32 %v165_v2, %v171_v4 }
 0x104   : > { %v173_v6 = vmul.f32 1.442695, %v172_v5 }
 0x106   : > { %278 = vpow2.f32 %v173_v6 }
 0x10c   : > { %v279_v7 = vpop.eup %278 }
 0x10d   : > { %v175_v8 = vsel %vm168_vm1, %v279_v7, 0.0 }
 0x10e   : > { %176 = vadd.xlane.f32.xlu0 %v175_v8 }
 0x181   : > { %v177_v9 = vpop.xlane.xlu0 %176 }
 0x182   : > { %280 = vrcp.f32 %v177_v9 }
 0x188   : > { %v281_v10 = vpop.eup %280 }
 0x189   : > { %v179_v11 = vmul.f32 %v281_v10, %v279_v7 }
 0x18b   : > { %267 = vmatmul.msk.f32.vlgmr.msra.gmra.mxu1 %vm168_vm1, %v179_v11 }
 0x208   : > { %v200_v12 = vpop.f32.mrf.mxu1 }
 0x209   : > { %v203_v13 = vadd.f32 %v200_v12, %v139_v1 }
 0x20b   : > { %204 = vst.msk [vmem:[%s138_s19] sm:$0xff] %vm141_vm0, %v203_v13 }
 0x20c PF: > { %s12_s9 = sadd.s32 1, %s288_s9  }
 0x20d   : > { %p9_p4 = scmp.ge.s32.totalorder %s12_s9, 5  }
 0x20f   :  { %11 = sbr.rel (!%p9_p4) target bundleno = 1 (0x1), region = 58 }

// kernel: bprmfint_forward.2
= control target key start
LH: loop header
LB: loop body
LE: loop exit
PB: predicated region body
PF: predicated region fallthrough
CT: control target
= control target key end

     0   :  { %s763_s18 = smov 0   ;;  %s765_s19 = smov 0   ;;  %s901_s0 = inlined_call_operand.vmem [shape: f32[8,32], index: 0, kind: input, shape index: {}]   ;;  %s902_s1 = inlined_call_operand.vmem [shape: f32[32,512], index: 1, kind: input, shape index: {}]   ;;  %s903_s2 = inlined_call_operand.vmem [shape: f32[1,512], index: 2, kind: input, shape index: {}]   ;;  %s904_s3 = inlined_call_operand.vmem [shape: f32[16,1], index: 3, kind: output, shape index: {0}]   ;;  %s905_s4 = inlined_call_operand.vmem [shape: f32[16,1], index: 4, kind: output, shape index: {1}]   ;;  %s906_s5 = inlined_call_operand.vmem [shape: f32[16,32], index: 5, kind: output, shape index: {2}]  }
   0x1   :  { %s767_s20 = smov 0   ;;  %s769_s21 = smov 0  }
   0x2   :  { %s771_s22 = smov 0   ;;  %s773_s23 = smov 0  }
   0x3   :  { %s775_s24 = smov 0  }
   0x4 LB: > { %s25_s25 = sadd.s32 1, %s720_s22  ;;  %s28_s26 = sadd.s32 1, %s724_s23  ;;  %s728_s24 = sphi %s775_s24, %s16_s24   ;;  %s724_s23 = sphi %s773_s23, %s912_s23   ;;  %s720_s22 = sphi %s771_s22, %s911_s22   ;;  %s716_s21 = sphi %s769_s21, %s910_s21   ;;  %s712_s20 = sphi %s767_s20, %s909_s20   ;;  %s708_s19 = sphi %s765_s19, %s908_s19   ;;  %s704_s18 = sphi %s763_s18, %s907_s18  }
   0x5   : > { %p26_p0 = scmp.ge.s32.totalorder %s25_s25, 2  ;;  %p67_p1 = scmp.ne.s32.totalorder %s708_s19, %s704_s18 }
   0x6   : > { %p68_p2 = scmp.eq.s32.totalorder %s728_s24, 0  ;;  %s588_s27 = sshll.u32 %s724_s23, 1 }
   0x7   : > { %s914_s25 = smov (%p26_p0, %s25_s25), 0  ;;  %s916_s26 = smov (!%p26_p0, %s28_s26), %s724_s23 }
   0x8   : > { %p30_p3 = scmp.ge.s32.totalorder %s916_s26, 2  ;;  %p69_p4 = por %p68_p2, %p67_p1 }
   0x9   : > { %s54_s28 = sadd.s32 %s720_s22, %s588_s27  ;;  %s60_s7 = sadd.s32 1, %s708_s19 }
   0xa   : > { %s918_s26 = smov (%p30_p3, %s916_s26), 0  ;;  %p593_p6 = scmp.ge.s32.totalorder %s728_s24, 4 }
   0xb   : > { %s589_s29 = sshll.u32 %s918_s26, 1 }
   0xc   : > { %s56_s30 = sadd.s32 %s589_s29, %s914_s25  ;;  %204 = sbr.rel (%p593_p6) target bundleno = 25 (0x19), region = 20 }
   0xd   : > { %s57_s6 = ssub.s32 %s54_s28, %s56_s30 }
   0xe   : > { %p58_p5 = scmp.eq.s32.totalorder %s57_s6, 0 }
  0x10   : > { %s814_s8 = scalar_select %p58_p5, %s708_s19, %s60_s7  }
  0x11   : > { %207 = sbr.rel (!%p69_p4) target bundleno = 25 (0x19), region = 24  ;;  %s209_s9 = sand.u32 (%p69_p4), 1, %s708_s19  }
  0x12   : > { %s596_s10 = sshll.u32 (%p69_p4), %s54_s28, 3  ;;  %s594_s11 = sshll.u32 (%p69_p4), %s209_s9, 5 }
  0x13   : > { %s215_s14 = scalar_lea.vmem (%p69_p4), %s902_s1, %s596_s10  ;;  %s211_s15 = scalar_lea.vmem (%p69_p4), [#allocation5], %s594_s11 }
  0x14   : > { %v250_v0 = vld [vmem:[%s215_s14] sm:$0xff] (%p69_p4) }
  0x15   : > { %v252_v1 = vld [vmem:[%s215_s14 + $0x20] sm:$0xff] (%p69_p4)  ;;  %251 = vst [vmem:[%s211_s15] sm:$0xff] (%p69_p4), %v250_v0 }
  0x16   : > { %v254_v2 = vld [vmem:[%s215_s14 + $0x40] sm:$0xff]  ;;  %253 = vst [vmem:[%s211_s15 + $0x8] sm:$0xff] %v252_v1 }
  0x17   : > { %v256_v3 = vld [vmem:[%s215_s14 + $0x60] sm:$0xff]  ;;  %255 = vst [vmem:[%s211_s15 + $0x10] sm:$0xff] %v254_v2 }
  0x18   : > { %257 = vst [vmem:[%s211_s15 + $0x18] sm:$0xff] %v256_v3 }
  0x19 PF: > { %p597_p7 = scmp.ge.s32.totalorder %s728_s24, 1  ;;  %p272_p8 = scmp.lt.s32.totalorder %s728_s24, 5 }
  0x1b   : > { %p273_p9 = pnand %p597_p7, %p272_p8 }
  0x1c   : > { %s279_s16 = sand.u32 (!%p273_p9), 1, %s704_s18   ;;  %s599_s17 = sshll.u32 (!%p273_p9), %s716_s21, 1 }
  0x1d   : > { %276 = sbr.rel (%p273_p9) target bundleno = 563 (0x233), region = 66  ;;  %s598_s27 = sshll.u32 (!%p273_p9), %s279_s16, 5 }
  0x1e   : > { %s321_s28 = sadd.s32 (!%p273_p9), %s712_s20, %s599_s17  ;;  %p327_p11 = scmp.lt.s32.totalorder (!%p273_p9), %s716_s21, 1 }
  0x1f   : > { %p322_p10 = scmp.lt.s32.totalorder (!%p273_p9), %s321_s28, 3  ;;  %s281_s17 = scalar_lea.vmem (!%p273_p9), [#allocation5], %s598_s27 }
  0x20   : > { %p603_p12 = scmp.ne.s32.totalorder (!%p273_p9), %s712_s20, 0 }
  0x22   : > { %s920_s28 = smov (!%p322_p10, %s321_s28), 3  ;;  %s922_s21 = smov (!%p327_p11, %s716_s21), 1 }
  0x23   : > { %s324_s6 = scalar_lea.vmem %s903_s2, %s920_s28  ;;  %s834_s7 = sshll.u32 %s922_s21, 3 }
  0x24   : > { %s330_s18 = scalar_lea.vmem %s904_s3, %s834_s7  ;;  %s334_s13 = scalar_lea.vmem %s905_s4, %s834_s7 }
  0x25   : > { %s338_s16 = scalar_lea.vmem %s906_s5, %s834_s7  ;;  %342 = sbr.rel (%p603_p12) target bundleno = 46 (0x2e), region = 74 }
  0x2a   : > { %vm343_vm0 = vcmask 7168   ;;  %vm346_vm1 = vcmask 261120   ;;  %v730_v4 = vmov -inf   ;;  %v731_v5 = vmov 0.0  }
  0x2b   : > { %344 = vst.msk [vmem:[#allocation2] sm:$0xff] %vm343_vm0, %v730_v4 }
  0x2c   : > { %345 = vst.msk [vmem:[#allocation3] sm:$0xff] %vm343_vm0, %v731_v5 }
  0x2d   : > { %347 = vst.msk [vmem:[#allocation4] sm:$0xff] %vm346_vm1, %v731_v5 }
  0x2e PF: > { %v352_v6 = vld [vmem:[%s281_s17 + $0x18] sm:$0xff]  ;;  %v351_v7 = vld [vmem:[%s281_s17 + $0x10] sm:$0xff]  ;;  %v350_v8 = vld [vmem:[%s281_s17 + $0x8] sm:$0xff]  ;;  %vm357_vm2 = vcmask 261120   ;;  %v732_v14 = vmov 0   ;;  %vm401_vm3 = vcmask 7168  }
  0x2f   : > { %373 = vmatpush.msra.mxu0 %v352_v6  ;;  %422 = vmatpush.xpose.msra.mxu1 %v352_v6  ;;  %v349_v9 = vld [vmem:[%s281_s17] sm:$0xff]  ;;  %v348_v10 = vld [vmem:[%s901_s0] sm:$0xff]  ;;  %p605_p13 = scmp.ne.s32.totalorder %s712_s20, 1 }
  0x30   : > { %v669_v11 = vld [vmem:[%s324_s6] ss:$0 sm:$0xff]  ;;  %667 = vset.pattern.permute.xlu0 %v732_v14  ;;  %668 = vset.pattern.permute.xlu1 %v732_v14 }
  0x31   : > { %374 = vmatpush.msra.mxu0 %v351_v7 }
  0x32   : > { %v381_v15 = vld [vmem:[#allocation2] sm:$0xff] }
  0x33   : > { %375 = vmatpush.msra.mxu0 %v350_v8  ;;  %423 = vmatpush.xpose.msra.mxu1 %v351_v7  ;;  %v396_v26 = vld [vmem:[#allocation3] sm:$0xff] }
  0x34   : > { %v403_v30 = vld [vmem:[#allocation4] sm:$0xff] }
  0x35   : > { %376 = vmatpush.msra.mxu0 %v349_v9 }
  0x36   : > { %604 = vmatmul.msk.f32.vlgmr.msra.gmra.mxu0 %vm357_vm2, %v348_v10 }
  0x37   : > { %424 = vmatpush.xpose.msra.mxu1 %v350_v8 }
  0x3b   : > { %425 = vmatpush.xpose.msra.mxu1 %v349_v9 }
  0xb3   : > { %v378_v12 = vpop.f32.mrf.mxu0 }
  0xb4   : > { %v379_v13 = vadd.f32 %v669_v11, %v378_v12 }
  0xb6   : > { %382 = vmax.xlane.f32.xlu0 %v379_v13 }
 0x129   : > { %v383_v16 = vpop.xlane.xlu0 %382 }
 0x12a   : > { %v384_v17 = vmax.f32 %v381_v15, %v383_v16 }
 0x12c   : > { %v385_v18 = vsub.f32 %v381_v15, %v384_v17  ;;  %432 = vst.msk [vmem:[#allocation2] sm:$0xff] %vm401_vm3, %v384_v17  ;;  %390 = vperm.xlu0 %667, %v384_v17  }
 0x12e   : > { %v386_v19 = vmul.f32 1.442695, %v385_v18 }
 0x130   : > { %670 = vpow2.f32 %v386_v19 }
 0x136   : > { %v671_v20 = vpop.eup %670 }
 0x137   : > { %406 = vperm.xlu1 %668, %v671_v20   ;;  %v397_v27 = vmul.f32 %v671_v20, %v396_v26 }
 0x19e   : > { %v391_v21 = vpop.permute.xlu0 %390 }
 0x19f   : > { %v393_v22 = vsub.f32 %v379_v13, %v391_v21 }
 0x1a1   : > { %v394_v23 = vmul.f32 1.442695, %v393_v22 }
 0x1a3   : > { %672 = vpow2.f32 %v394_v23 }
 0x1a9   : > { %v673_v24 = vpop.eup %672  ;;  %v407_v25 = vpop.permute.xlu1 %406 }
 0x1aa   : > { %426 = vmatmul.f32.vlgmr.msra.gmra.mxu1 %v673_v24  ;;  %398 = vadd.xlane.f32.xlu1 %v673_v24  ;;  %v409_v31 = vmul.f32 %v407_v25, %v403_v30 }
 0x21d   : > { %v399_v28 = vpop.xlane.xlu1 %398 }
 0x21e   : > { %v400_v29 = vadd.f32 %v399_v28, %v397_v27 }
 0x220   : > { %402 = vst.msk [vmem:[#allocation3] sm:$0xff] %vm401_vm3, %v400_v29 }
 0x226   : > { %436 = sbr.rel (%p605_p13) target bundleno = 563 (0x233), region = 78 }
 0x227   : > { %v427_v32 = vpop.f32.mrf.mxu1 }
 0x228   : > { %v430_v33 = vadd.f32 %v427_v32, %v409_v31 }
 0x22a   : > { %431 = vst.msk [vmem:[#allocation4] sm:$0xff] %vm357_vm2, %v430_v33 }
 0x22b   : > { %v437_v34 = vld [vmem:[#allocation2] sm:$0xff]  ;;  %v439_v35 = vld [vmem:[#allocation3] sm:$0xff] }
 0x22c   : > { %438 = vst.msk [vmem:[%s330_s18] sm:$0xff] %vm401_vm3, %v437_v34 }
 0x22d   : > { %440 = vst.msk [vmem:[%s334_s13] sm:$0xff] %vm401_vm3, %v439_v35 }
 0x231   : > { %v441_v36 = vld [vmem:[#allocation4] sm:$0xff] }
 0x232   : > { %442 = vst.msk [vmem:[%s338_s16] sm:$0xff] %vm357_vm2, %v441_v36 }
 0x233 PF: > { %s16_s24 = sadd.s32 1, %s728_s24   ;;  %s907_s18 = smov %s708_s19 }
 0x234   : > { %p13_p0 = scmp.ge.s32.totalorder %s16_s24, 6   ;;  %s908_s19 = smov %s814_s8 }
 0x235   : > { %s909_s20 = smov %s720_s22  ;;  %s910_s21 = smov %s724_s23 }
 0x236   : > { %s911_s22 = smov %s914_s25  ;;  %s912_s23 = smov %s918_s26 }
 0x237   :  { %15 = sbr.rel (!%p13_p0) target bundleno = 4 (0x4), region = 140 }

</bundles_post_ra>
